<compile_context>
chip_gen: v6e
topology: v6e:2x2x1
jax: 0.10.0
libtpu: 0.0.40
codegen_flags: <defaults>
</compile_context>

<pallas_src>
import functools

import jax
import jax.numpy as jnp
from jax.experimental import pallas as pl
from jax.experimental.pallas import tpu as pltpu


# ----------------------------------------------------------------------------
# Kernel
# ----------------------------------------------------------------------------
def _tconv_kernel(*refs, Kt, c_in, c_out, T_out, V, act_func, align_mode):
    # refs (align_mode == "conv"): x, w, b, align_w, align_b, out
    # refs (otherwise):            x, w, b, out
    if align_mode == "conv":
        x_ref, w_ref, b_ref, aw_ref, ab_ref, o_ref = refs
    else:
        x_ref, w_ref, b_ref, o_ref = refs
        aw_ref = ab_ref = None

    G = x_ref.shape[0]              # batch elements per grid step
    TV_out = T_out * V

    w = w_ref[...]                  # (n_conv, Kt*c_in), k-major / c-minor cols
    b = b_ref[...]                  # (n_conv, 1)
    if align_mode == "conv":
        aw = aw_ref[...]            # (c_out, c_in)
        ab = ab_ref[...]            # (c_out, 1)

    for g in range(G):              # static, small
        x_g = x_ref[g].astype(jnp.float32)              # (c_in, T*V)

        # im2col window: rows (k, c) k-major, cols (t_out, v) — contiguous
        # lane slices because (T, V) is flattened.
        xw = jnp.concatenate(
            [x_g[:, k * V:k * V + TV_out] for k in range(Kt)], axis=0)

        # one fused MXU matmul: (n_conv, Kt*c_in) @ (Kt*c_in, T_out*V)
        conv = jnp.dot(w, xw, preferred_element_type=jnp.float32) + b

        # residual / align path (fused; same contiguous lane slice of x)
        x_res = x_g[:, (Kt - 1) * V:(Kt - 1) * V + TV_out]   # (c_in, T_out*V)
        if align_mode == "conv":        # c_in > c_out: 1x1 conv align on MXU
            res = jnp.dot(aw, x_res, preferred_element_type=jnp.float32) + ab
        elif align_mode == "pad":       # c_in < c_out: zero-pad channels
            res = jnp.concatenate(
                [x_res, jnp.zeros((c_out - c_in, TV_out), jnp.float32)],
                axis=0)
        else:                           # identity
            res = x_res

        if act_func in ("glu", "gtu"):
            # sublane (channel-axis) split — no lane shuffles
            x_p = conv[:c_out, :]
            x_q = conv[c_out:, :]
            if act_func == "glu":
                out = (x_p + res) * jax.nn.sigmoid(x_q)
            else:
                out = jnp.tanh(x_p + res) * jax.nn.sigmoid(x_q)
        elif act_func == "relu":
            out = jnp.maximum(conv + res, 0.0)
        elif act_func == "silu":
            z = conv + res              # module applies SiLU to (conv + x_in)
            out = z * jax.nn.sigmoid(z)
        else:
            raise NotImplementedError(f"activation {act_func} not implemented")

        o_ref[g] = out.astype(o_ref.dtype)


# ----------------------------------------------------------------------------
# Wrapper
# ----------------------------------------------------------------------------
def _pick_block_b(B, c_in, c_out, T, T_out, V, itemsize):
    """Largest divisor of B fitting a ~8 MiB double-buffered block budget,
    keeping >= 2 grid steps when possible (megacore / v7x dual-TC)."""
    per_b = (c_in * T * V + c_out * T_out * V) * itemsize
    budget = 8 * 1024 * 1024
    g_cap = max(1, budget // max(1, 2 * per_b))
    if B >= 2:
        g_cap = min(g_cap, B // 2)
    g = 1
    for d in range(1, min(B, g_cap) + 1):
        if B % d == 0:
            g = d
    return g


def temporal_conv_layer(x, conv_weight, conv_bias, *, Kt, c_out,
                        act_func="glu", align_weight=None, align_bias=None,
                        block_b=None):
    """x: (B, c_in, T, V) NCHW, same as the PyTorch module.  Returns NCHW."""
    B, c_in, T, V = x.shape
    T_out = T - Kt + 1
    n_conv = 2 * c_out if act_func in ("glu", "gtu") else c_out
    assert conv_weight.shape == (n_conv, c_in, Kt, 1)
    assert conv_bias.shape == (n_conv,)

    if c_in > c_out:
        align_mode = "conv"
        assert align_weight is not None and align_bias is not None
        aw = align_weight[:, :, 0, 0].astype(jnp.float32)          # (c_out, c_in)
        ab = align_bias.reshape(c_out, 1).astype(jnp.float32)      # (c_out, 1)
    elif c_in < c_out:
        align_mode = "pad"
    else:
        align_mode = "identity"

    # weight (n_conv, c_in, Kt, 1) -> (n_conv, Kt*c_in), k-major / c-minor
    w = jnp.transpose(conv_weight[:, :, :, 0], (0, 2, 1)).reshape(
        n_conv, Kt * c_in)
    b2 = conv_bias.reshape(n_conv, 1)

    # flatten (T, V) -> contiguous trailing axis (free reshape, no transpose)
    x_flat = x.reshape(B, c_in, T * V)

    if block_b is None:
        block_b = _pick_block_b(B, c_in, c_out, T, T_out, V,
                                jnp.dtype(x.dtype).itemsize)
    assert B % block_b == 0

    kernel = functools.partial(
        _tconv_kernel, Kt=Kt, c_in=c_in, c_out=c_out, T_out=T_out, V=V,
        act_func=act_func, align_mode=align_mode)

    in_specs = [
        pl.BlockSpec((block_b, c_in, T * V), lambda i: (i, 0, 0)),
        pl.BlockSpec((n_conv, Kt * c_in), lambda i: (0, 0)),
        pl.BlockSpec((n_conv, 1), lambda i: (0, 0)),
    ]
    args = [x_flat, w, b2]
    if align_mode == "conv":
        in_specs += [
            pl.BlockSpec((c_out, c_in), lambda i: (0, 0)),
            pl.BlockSpec((c_out, 1), lambda i: (0, 0)),
        ]
        args += [aw, ab]

    out_flat = pl.pallas_call(
        kernel,
        out_shape=jax.ShapeDtypeStruct((B, c_out, T_out * V), x.dtype),
        grid_spec=pltpu.PrefetchScalarGridSpec(
            num_scalar_prefetch=0,
            grid=(B // block_b,),
            in_specs=in_specs,
            out_specs=pl.BlockSpec((block_b, c_out, T_out * V),
                                   lambda i: (i, 0, 0)),
        ),
        compiler_params=pltpu.CompilerParams(
            dimension_semantics=("parallel",),
            vmem_limit_bytes=32 * 1024 * 1024),   # <= physical on v5e/v6e/v7x
    )(*args)

    return out_flat.reshape(B, c_out, T_out, V)   # NCHW (free reshape)


# ----------------------------------------------------------------------------
# Pure-JAX reference (reproduces the PyTorch forward for all branches)
# ----------------------------------------------------------------------------
def _reference(x, conv_weight, conv_bias, Kt, c_out, act_func,
               align_weight=None, align_bias=None):
    B, c_in, T, V = x.shape
    T_out = T - Kt + 1
    windows = jnp.stack([x[:, :, k:k + T_out, :] for k in range(Kt)], axis=2)
    conv = jnp.einsum("bcktv,ock->botv", windows, conv_weight[:, :, :, 0]) \
           + conv_bias[None, :, None, None]
    if c_in > c_out:
        x_al = jnp.einsum("oc,bctv->botv", align_weight[:, :, 0, 0], x) \
               + align_bias[None, :, None, None]
    elif c_in < c_out:
        x_al = jnp.concatenate(
            [x, jnp.zeros((B, c_out - c_in, T, V), x.dtype)], axis=1)
    else:
        x_al = x
    x_in = x_al[:, :, Kt - 1:, :]
    if act_func in ("glu", "gtu"):
        x_p, x_q = conv[:, :c_out], conv[:, c_out:]
        if act_func == "glu":
            return (x_p + x_in) * jax.nn.sigmoid(x_q)
        return jnp.tanh(x_p + x_in) * jax.nn.sigmoid(x_q)
    if act_func == "relu":
        return jnp.maximum(conv + x_in, 0.0)
    if act_func == "silu":
        z = conv + x_in
        return z * jax.nn.sigmoid(z)
    raise NotImplementedError


# ----------------------------------------------------------------------------
if __name__ == "__main__":
    key = jax.random.PRNGKey(0)

    def run_case(B, c_in, c_out, T, V, Kt, act_func, key):
        n_conv = 2 * c_out if act_func in ("glu", "gtu") else c_out
        kx, kw, kb, kaw, kab = jax.random.split(key, 5)
        x = jax.random.normal(kx, (B, c_in, T, V), dtype=jnp.float32)
        conv_weight = 0.1 * jax.random.normal(
            kw, (n_conv, c_in, Kt, 1), dtype=jnp.float32)
        conv_bias = 0.1 * jax.random.normal(kb, (n_conv,), dtype=jnp.float32)
        align_weight = align_bias = None
        if c_in > c_out:
            align_weight = 0.1 * jax.random.normal(
                kaw, (c_out, c_in, 1, 1), dtype=jnp.float32)
            align_bias = 0.1 * jax.random.normal(kab, (c_out,),
                                                 dtype=jnp.float32)
        out = temporal_conv_layer(
            x, conv_weight, conv_bias, Kt=Kt, c_out=c_out, act_func=act_func,
            align_weight=align_weight, align_bias=align_bias)
        out = jax.block_until_ready(out)
        ref = _reference(x, conv_weight, conv_bias, Kt, c_out, act_func,
                         align_weight, align_bias)
        assert out.shape == (B, c_out, T - Kt + 1, V)
        assert jnp.allclose(out, ref, atol=2e-5, rtol=2e-5), act_func
        return out

    k1, k2, k3 = jax.random.split(key, 3)
    # zero-pad residual (c_in < c_out), GLU — the common STGCN configuration
    run_case(B=2, c_in=4, c_out=8, T=8, V=16, Kt=3, act_func="glu", key=k1)
    # identity residual (c_in == c_out), SiLU
    run_case(B=2, c_in=8, c_out=8, T=8, V=16, Kt=3, act_func="silu", key=k2)
    # fused 1x1 align conv (c_in > c_out), GTU
    run_case(B=2, c_in=8, c_out=4, T=8, V=16, Kt=3, act_func="gtu", key=k3)

    print("KERNEL_OK")
</pallas_src>

<mosaic_0001>
module attributes {stable_mosaic.version = 11 : i64} {
  func.func @_tconv_kernel(%arg0: i32, %arg1: memref<1x4x128xf32, #tpu.memory_space<vmem>>, %arg2: memref<16x12xf32, #tpu.memory_space<vmem>>, %arg3: memref<16x1xf32, #tpu.memory_space<vmem>>, %arg4: memref<1x8x96xf32, #tpu.memory_space<vmem>>) attributes {dimension_semantics = [#tpu.dimension_semantics<parallel>], iteration_bounds = array<i64: 2>, scalar_prefetch = 0 : i64, scratch_operands = 0 : i64, tpu.core_type = #tpu.core_type<tc>, window_params = [{transform_indices = @transform_0, window_bounds = array<i64: 1, 4, 128>}, {pipeline_mode = #tpu.pipeline_mode<synchronous>, transform_indices = @transform_1, window_bounds = array<i64: 16, 12>}, {pipeline_mode = #tpu.pipeline_mode<synchronous>, transform_indices = @transform_2, window_bounds = array<i64: 16, 1>}, {transform_indices = @transform_3, window_bounds = array<i64: 1, 8, 96>}]} {
    %c0 = arith.constant 0 : index
    %c0_0 = arith.constant 0 : index
    %0 = vector.load %arg2[%c0, %c0_0] : memref<16x12xf32, #tpu.memory_space<vmem>>, vector<16x12xf32>
    %c0_1 = arith.constant 0 : index
    %c0_2 = arith.constant 0 : index
    %1 = vector.load %arg3[%c0_1, %c0_2] : memref<16x1xf32, #tpu.memory_space<vmem>>, vector<16x1xf32>
    %c0_3 = arith.constant 0 : index
    %c0_4 = arith.constant 0 : index
    %c0_5 = arith.constant 0 : index
    %2 = vector.load %arg1[%c0_3, %c0_4, %c0_5] : memref<1x4x128xf32, #tpu.memory_space<vmem>>, vector<1x4x128xf32>
    %3 = vector.shape_cast %2 : vector<1x4x128xf32> to vector<4x128xf32>
    %4 = vector.extract_strided_slice %3 {offsets = [0, 0], sizes = [4, 96], strides = [1, 1]} : vector<4x128xf32> to vector<4x96xf32>
    %5 = vector.extract_strided_slice %3 {offsets = [0, 16], sizes = [4, 96], strides = [1, 1]} : vector<4x128xf32> to vector<4x96xf32>
    %6 = vector.extract_strided_slice %3 {offsets = [0, 32], sizes = [4, 96], strides = [1, 1]} : vector<4x128xf32> to vector<4x96xf32>
    %7 = tpu.concatenate %4, %5, %6 in 0 : vector<4x96xf32>, vector<4x96xf32>, vector<4x96xf32> -> vector<12x96xf32>
    %cst = arith.constant dense<0.000000e+00> : vector<16x96xf32>
    %8 = tpu.matmul %0, %7, %cst {dimension_numbers = #tpu.dot_dimension_numbers<[1], [0], [0], [1], [0, 0, 1, 1], [], []>} : vector<16x12xf32>, vector<12x96xf32>, vector<16x96xf32> -> vector<16x96xf32>
    %9 = vector.broadcast %1 : vector<16x1xf32> to vector<16x96xf32>
    %10 = arith.addf %8, %9 : vector<16x96xf32>
    %11 = vector.extract_strided_slice %3 {offsets = [0, 32], sizes = [4, 96], strides = [1, 1]} : vector<4x128xf32> to vector<4x96xf32>
    %cst_6 = arith.constant 0.000000e+00 : f32
    %12 = vector.broadcast %cst_6 : f32 to vector<4x96xf32>
    %13 = tpu.concatenate %11, %12 in 0 : vector<4x96xf32>, vector<4x96xf32> -> vector<8x96xf32>
    %14 = vector.extract_strided_slice %10 {offsets = [0, 0], sizes = [8, 96], strides = [1, 1]} : vector<16x96xf32> to vector<8x96xf32>
    %15 = vector.extract_strided_slice %10 {offsets = [8, 0], sizes = [8, 96], strides = [1, 1]} : vector<16x96xf32> to vector<8x96xf32>
    %16 = arith.addf %14, %13 : vector<8x96xf32>
    %17 = arith.negf %15 : vector<8x96xf32>
    %18 = math.exp %17 : vector<8x96xf32>
    %cst_7 = arith.constant 1.000000e+00 : f32
    %19 = vector.broadcast %cst_7 : f32 to vector<8x96xf32>
    %20 = arith.addf %19, %18 : vector<8x96xf32>
    %21 = arith.divf %19, %20 : vector<8x96xf32>
    %22 = arith.mulf %16, %21 : vector<8x96xf32>
    %c0_8 = arith.constant 0 : index
    %c0_9 = arith.constant 0 : index
    %c0_10 = arith.constant 0 : index
    %23 = vector.load %arg4[%c0_8, %c0_9, %c0_10] : memref<1x8x96xf32, #tpu.memory_space<vmem>>, vector<1x8x96xf32>
    %24 = vector.shape_cast %23 : vector<1x8x96xf32> to vector<8x96xf32>
    %25 = vector.shape_cast %22 : vector<8x96xf32> to vector<1x8x96xf32>
    tpu.vector_store %arg4[%c0_8, %c0_9, %c0_10], %25 {strides = array<i32>} : memref<1x8x96xf32, #tpu.memory_space<vmem>>, vector<1x8x96xf32>,
    return
  }
  func.func @transform_0(%arg0: i32) -> (i32, i32, i32) {
    %c0_i32 = arith.constant 0 : i32
    %c0_i32_0 = arith.constant 0 : i32
    %c0_i32_1 = arith.constant 0 : i32
    return %arg0, %c0_i32, %c0_i32_0 : i32, i32, i32
  }
  func.func @transform_1(%arg0: i32) -> (i32, i32) {
    %c0_i32 = arith.constant 0 : i32
    %c0_i32_0 = arith.constant 0 : i32
    %c0_i32_1 = arith.constant 0 : i32
    return %c0_i32, %c0_i32_0 : i32, i32
  }
  func.func @transform_2(%arg0: i32) -> (i32, i32) {
    %c0_i32 = arith.constant 0 : i32
    %c0_i32_0 = arith.constant 0 : i32
    %c0_i32_1 = arith.constant 0 : i32
    return %c0_i32, %c0_i32_0 : i32, i32
  }
  func.func @transform_3(%arg0: i32) -> (i32, i32, i32) {
    %c0_i32 = arith.constant 0 : i32
    %c0_i32_0 = arith.constant 0 : i32
    %c0_i32_1 = arith.constant 0 : i32
    return %arg0, %c0_i32, %c0_i32_0 : i32, i32, i32
  }
}

</mosaic_0001>

<bundles_post_ra>
// kernel: tpu_custom_call.1
= control target key start
LH: loop header
LB: loop body
LE: loop exit
PB: predicated region body
PF: predicated region fallthrough
CT: control target
= control target key end

     0   :  { %8 = vsyncpa [#allocation3], 0  ;;  %s750_s0 = inlined_call_operand.hbm [shape: f32[2,4,128], index: 0, kind: input, shape index: {}]   ;;  %s751_s1 = inlined_call_operand.vmem [shape: f32[16,12], index: 1, kind: input, shape index: {}]   ;;  %s752_s2 = inlined_call_operand.vmem [shape: f32[16,1], index: 2, kind: input, shape index: {}]   ;;  %s753_s3 = inlined_call_operand.hbm [shape: f32[2,8,96], index: 3, kind: output, shape index: {}]  }
   0x1   :  { %10 = vsyncpa [#allocation3 + $0x1], 0 }
   0x2   :  { %11 = vsyncpa [#allocation4], 0 }
   0x3   :  { %13 = vsyncpa [#allocation4 + $0x1], 0  ;;  %s594_s12 = smov 0   ;;  %s596_s13 = smov 0  }
   0x4   :  { %s598_s14 = smov 0   ;;  %s600_s15 = smov 0  }
   0x5 LB: > { %s615_s16 = sadd.s32 4294967295, %s567_s15   ;;  %s393_s17 = sadd.s32 4294967294, %s567_s15   ;;  %s567_s15 = sphi %s600_s15, %s770_s15   ;;  %s563_s14 = sphi %s598_s14, %s769_s14   ;;  %s559_s13 = sphi %s596_s13, %s768_s13   ;;  %s555_s12 = sphi %s594_s12, %s767_s12  }
   0x6   : > { %s619_s18 = sadd.s32 1, %s567_s15   ;;  %s26_s19 = sadd.s32 1, %s563_s14 }
   0x7   : > { %s23_s20 = ssub.s32 %s567_s15, %s619_s18  ;;  %p33_p0 = scmp.ne.s32.totalorder %s563_s14, %s559_s13 }
   0x8   : > { %p24_p1 = scmp.eq.s32.totalorder %s23_s20, 0  ;;  %p34_p2 = scmp.eq.s32.totalorder %s567_s15, 0 }
   0x9   : > { %p39_p3 = scmp.ne.s32.totalorder %s559_s13, %s555_s12  ;;  %p40_p4 = scmp.eq.s32.totalorder %s615_s16, 0 }
   0xa   : > { %s631_s21 = scalar_select %p24_p1, %s563_s14, %s26_s19  }
   0xb   : > { %p633_p5 = por %p34_p2, %p33_p0  ;;  %p637_p6 = por %p40_p4, %p39_p3 }
   0xc   : > { %p105_p7 = scmp.eq.s32.totalorder %s615_s16, 1  ;;  %p111_p8 = scmp.eq.s32.totalorder %s393_s17, 1 }
   0xd   : > { %s757_s23 = scalar_select %p637_p6, 1, 0 }
   0xe   : > { %p432_p10 = scmp.lt.s32.totalorder %s567_s15, 2  ;;  %p644_p11 = por %p105_p7, %p33_p0 }
   0xf   : > { %p648_p12 = por %p111_p8, %p39_p3  ;;  %s137_s26 = sand.u32 1, %s563_s14  }
  0x10   : > { %s758_s24 = scalar_select %p644_p11, 1, 0 }
  0x11   : > { %s759_s25 = scalar_select %p648_p12, 1, 0 }
  0x12   : > { %s397_s27 = sshll.u32 %s567_s15, 6  ;;  %s396_s28 = sshll.u32 %s137_s26, 2 }
  0x13   : > { %s657_s4 = scalar_lea.hbm %s750_s0, %s397_s27  ;;  %s141_s5 = scalar_lea.vmem [#allocation2], %s396_s28 }
  0x14   : > { %s148_s6 = sshll.u32 %s141_s5, 4  ;;  %p661_p13 = pnand %p432_p10, %p633_p5  ;;  %s665_s6 = int_to_ptr.vmem [resolvable:$true] %s148_s6 }
  0x15   : > { %s138_s8 = scalar_lea.sflag [#allocation3], %s137_s26  ;;  %s475_s9 = scalar_lea.hbm %s657_s4, 64 }
  0x16   : > { %p476_p2 = scmp.ne.s32.totalorder %s657_s4, %s475_s9  ;;  %p477_p3 = pneg %p661_p13 }
  0x17   : > { %s480_s17 = scalar_lea.hbm %s750_s0, 128  ;;  %p481_p5 = scmp.lt.s32.totalorder %s657_s4, %s750_s0 }
  0x18   : > { %p478_p4 = pnand %p477_p3, %p476_p2  ;;  %p482_p8 = scmp.lt.s32.totalorder %s480_s17, %s475_s9 }
  0x1a   : > { %p479_p7 = pneg %p478_p4  ;;  %p483_p10 = por %p482_p8, %p481_p5 }
  0x1c   : > { %p484_p9 = pnand %p483_p10, %p479_p7 }
  0x1e   : > { %487 = shalt.err (!%p484_p9)
}
  0x1f   : > { %s488_s22 = scalar_lea.vmem %s665_s6, 64  ;;  %s569_s26 = smov [#allocation2]  }
  0x20   : > { %p489_p0 = scmp.ne.s32.totalorder %s665_s6, %s488_s22  ;;  %s493_s27 = sshll.u32 %s569_s26, 4  ;;  %s494_s27 = int_to_ptr.vmem [resolvable:$false] %s493_s27 }
  0x21   : > { %s495_s28 = scalar_lea.vmem %s494_s27, 128  ;;  %p496_p4 = scmp.lt.s32.totalorder %s665_s6, %s494_s27 }
  0x22   : > { %p491_p1 = pnand %p489_p0, %p477_p3  ;;  %p497_p12 = scmp.lt.s32.totalorder %s495_s28, %s488_s22 }
  0x24   : > { %p492_p2 = pneg %p491_p1  ;;  %p498_p11 = por %p497_p12, %p496_p4 }
  0x26   : > { %p499_p6 = pnand %p498_p11, %p492_p2 }
  0x28   : > { %502 = shalt.err (!%p499_p6)
}
  0x29   : > { %427 = dma.hbm_to_vmem [thread:$0]  (!%p661_p13), %s657_s4, 64, %s665_s6, %s138_s8  }
  0x2a   : > { %p761_p9 = scmp.lt.s32.totalorder %s567_s15, 3  ;;  %p762_p7 = scmp.ge.s32.totalorder %s567_s15, 1 }
  0x2c   : > { %p154_p0 = pnand %p762_p7, %p761_p9 }
  0x2d   : > { %s692_s29 = sand.u32 (!%p154_p0), 1, %s559_s13   ;;  %p763_p6 = scmp.ne.s32.totalorder (!%p154_p0), %s757_s23, 0 }
  0x2e   : > { %157 = sbr.rel (%p154_p0) target bundleno = 418 (0x1a2), region = 32  ;;  %s399_s30 = sshll.u32 (!%p154_p0), %s692_s29, 2 }
  0x2f   : > { %s160_s5 = scalar_lea.sflag (!%p154_p0), [#allocation3], %s692_s29  ;;  %s163_s9 = scalar_lea.vmem (!%p154_p0), [#allocation2], %s399_s30 }
  0x33   : > { %546 = dma.done.wait (%p763_p6), %s160_s5, 64  }
  0x34   : > { %548 = vsyncadd (%p763_p6), %s160_s5, 4294967232  ;;  %v570_v0 = vmov 0   ;;  %vm210_vm0 = vcmask 97280   ;;  %v190_v1 = vld [vmem:[%s163_s9] sm:$0xf]  ;;  %s571_s7 = smov 96  }
  0x35   : > { %469 = vset.pattern.permute.xlu1 %v570_v0  ;;  %470 = vset.pattern.permute.xlu0 %v570_v0  ;;  %v186_v2 = vld [vmem:[%s751_s1] sm:$0xff]  ;;  %v192_v3 = vrot.slane %v190_v1, 4  ;;  %v189_v4 = vld [vmem:[%s752_s2 + $0x8] sm:$0xff]  ;;  %s572_s17 = smov 112   ;;  %vm198_vm1 = vcmask 1043456   ;;  %s400_s22 = sshll.u32 %s692_s29, 3 }
  0x36   : > { %196 = vrot.lane.b32.xlu0 %v190_v1, %s571_s7  ;;  %417 = vmatprep.mubr.msk.f32.mxu0 %vm210_vm0, %v186_v2  ;;  %v188_v5 = vld [vmem:[%s752_s2] sm:$0xff]  ;;  %v294_v6 = vsel %vm198_vm1, %v190_v1, 0.0  ;;  %v187_v10 = vld [vmem:[%s751_s1 + $0x8] sm:$0xff]  ;;  %s406_s26 = sshll.u32 %s615_s16, 7  ;;  %s185_s27 = scalar_lea.vmem [#allocation5], %s400_s22  ;;  %vm307_vm2 = vcmask 785408  }
  0x37   : > { %207 = vperm.xlu1 %469, %v189_v4   ;;  %s323_s28 = sshll.u32 %s185_s27, 4  ;;  %s321_s9 = scalar_lea.hbm %s753_s3, %s406_s26  ;;  %s324_s28 = int_to_ptr.vmem [resolvable:$true] %s323_s28 }
  0x38   : > { %s310_s4 = scalar_lea.sflag [#allocation4], %s692_s29  ;;  %s503_s6 = scalar_lea.vmem %s324_s28, 128 }
  0x39   : > { %p504_p11 = scmp.ne.s32.totalorder %s324_s28, %s503_s6  ;;  %p764_p12 = scmp.ne.s32.totalorder %s758_s24, 0 }
  0x3a   : > { %193 = vrot.lane.b32.xlu0 %v192_v3, %s572_s17 }
  0x3b   : > { %202 = vperm.xlu1 %469, %v188_v5   ;;  %p505_p13 = pnand %p504_p11, %p764_p12 }
  0x3d   : > { %p506_p1 = pneg %p505_p13 }
  0x3e   : > { %296 = vrot.lane.b32.xlu0 %v294_v6, %s571_s7  ;;  %s573_s7 = smov [#allocation5]  }
  0x3f   : > { %s507_s16 = sshll.u32 %s573_s7, 4  ;;  %s508_s16 = int_to_ptr.vmem [resolvable:$false] %s507_s16 }
  0x40   : > { %s509_s8 = scalar_lea.vmem %s508_s16, 256  ;;  %p510_p3 = scmp.lt.s32.totalorder %s324_s28, %s508_s16 }
  0x41   : > { %p511_p5 = scmp.lt.s32.totalorder %s509_s8, %s503_s6 }
  0x43   : > { %p512_p8 = por %p511_p5, %p510_p3 }
  0x45   : > { %p513_p10 = pnand %p512_p8, %p506_p1 }
  0xa8   : > { %v197_v7 = vpop.permute.xlu0 %196 }
  0xa9   : > { %413 = vmatprep.subr.msk.mxu0 %vm198_vm1, %v197_v7 }
  0xaa   : > { %414 = vmatpush3.msk.msra.mxu0 %vm198_vm1, %v197_v7 }
  0xac   : > { %v194_v8 = vpop.permute.xlu0 %193 }
  0xad   : > { %v199_v9 = vsel %vm198_vm1, %v190_v1, %v194_v8 }
  0xae   : > { %415 = vmatprep.subr.mxu0 %v199_v9 }
  0xaf   : > { %416 = vmatpush3.msra.mxu0 %v199_v9 }
  0xb0   : > { %418 = vmatmul.mubr.msk.f32.vlgmr.msra.gmra.mxu0 %vm210_vm0, %v187_v10  ;;  %v297_v20 = vpop.permute.xlu0 %296 }
  0xb2   : > { %v208_v11 = vpop.permute.xlu1 %207 }
  0xb6   : > { %v203_v18 = vpop.permute.xlu1 %202 }
 0x170   : > { %v419_v12 = vpop.f32.mrf.mxu0 }
 0x171   : > { %v291_v13 = vadd.f32 %v419_v12, %v208_v11 }
 0x172   : > { %v285_v17 = vpop.f32.mrf.mxu0 }
 0x173   : > { %v404_v14 = vmul.f32 -1.442695, %v291_v13  ;;  %v286_v19 = vadd.f32 %v285_v17, %v203_v18 }
 0x175   : > { %471 = vpow2.f32 %v404_v14  ;;  %v299_v21 = vadd.f32 %v297_v20, %v286_v19 }
 0x182   : > { %v472_v15 = vpop.eup %471 }
 0x183   : > { %v303_v16 = vadd.f32 1.0, %v472_v15 }
 0x185   : > { %473 = vrcp.f32 %v303_v16 }
 0x192   : > { %v474_v22 = vpop.eup %473 }
 0x193   : > { %v306_v23 = vmul.f32 %v474_v22, %v299_v21 }
 0x195   : > { %308 = vst.msk [vmem:[%s185_s27] sm:$0xff] %vm307_vm2, %v306_v23 }
 0x196   : > { %516 = shalt.err (!%p513_p10)
}
 0x197   : > { %s517_s10 = scalar_lea.hbm %s321_s9, 128  ;;  %s521_s11 = scalar_lea.hbm %s753_s3, 256 }
 0x198   : > { %p518_p2 = scmp.ne.s32.totalorder %s321_s9, %s517_s10  ;;  %p522_p7 = scmp.lt.s32.totalorder %s321_s9, %s753_s3 }
 0x199   : > { %p523_p0 = scmp.lt.s32.totalorder %s521_s11, %s517_s10 }
 0x19a   : > { %p519_p4 = pnand %p518_p2, %p764_p12 }
 0x19b   : > { %p524_p6 = por %p523_p0, %p522_p7 }
 0x19c   : > { %p520_p9 = pneg %p519_p4 }
 0x19e   : > { %p525_p11 = pnand %p524_p6, %p520_p9 }
 0x1a0   : > { %528 = shalt.err (!%p525_p11)
}
 0x1a1   : > { %422 = dma.vmem_to_hbm [thread:$0]  (%p764_p12), %s324_s28, 128, %s321_s9, %s310_s4  }
 0x1a2 PF: > { %s335_s20 = sand.u32 1, %s555_s12   ;;  %p765_p13 = scmp.ne.s32.totalorder %s759_s25, 0 }
 0x1a3   : > { %p766_p1 = scmp.ge.s32.totalorder %s567_s15, 2  ;;  %s336_s22 = scalar_lea.sflag [#allocation4], %s335_s20 }
 0x1a5   : > { %p429_p3 = pnand %p766_p1, %p765_p13 }
 0x1a7   : > { %p430_p5 = pneg %p429_p3 }
 0x1a9   : > { %550 = dma.done.wait (%p430_p5), %s336_s22, 128  }
 0x1aa   : > { %552 = vsyncadd (%p430_p5), %s336_s22, 4294967168  ;;  %p16_p8 = scmp.ge.s32.totalorder %s619_s18, 4   ;;  %s767_s12 = smov %s559_s13 }
 0x1ab   : > { %s768_s13 = smov %s563_s14  ;;  %s769_s14 = smov %s631_s21 }
 0x1ac   : > { %s770_s15 = smov %s619_s18  ;;  %18 = sbr.rel (!%p16_p8) target bundleno = 5 (0x5), region = 77 }
 0x1b1   :  { %341 = vsyncpa [#allocation3], 1 }
 0x1b2   :  { %343 = vsyncpa [#allocation3 + $0x1], 1 }
 0x1b3   :  { %344 = vsyncpa [#allocation4], 1 }
 0x1b4   :  { %346 = vsyncpa [#allocation4 + $0x1], 1 }

</bundles_post_ra>
